<compile_context>
chip_gen: v5e
topology: v5e:2x2
jax: 0.10.0
libtpu: 0.0.40
codegen_flags: <defaults>
</compile_context>

<pallas_src>
import functools

import jax
import jax.numpy as jnp
from jax.experimental import pallas as pl
from jax.experimental.pallas import tpu as pltpu


def _pick_row_tile(n: int, logits_itemsize: int) -> int:
    """Largest row tile that divides N, keeps legal tiling for all input dtypes
    (f32/bf16/int8 => multiples of 32 on the sublane axis unless full extent),
    and fits a v7x-safe VMEM budget."""
    budget = 24 * 1024 * 1024  # headroom under 32 MiB scoped VMEM (v7x-safe)

    def fits(t):
        # 2x pipeline buffers for (logits + 3 int8 masks) + f32 accumulator scratch
        return t * n * ((logits_itemsize + 3) * 2 + 4) <= budget

    for t in (n, 2048, 1024, 512, 256, 128, 64, 32):
        if t <= n and n % t == 0 and (t == n or t % 32 == 0) and fits(t):
            return t
    return n  # awkward N: single full-extent row block (full-dims exemption)


def _relation_loss_kernel(logits_ref, valid_ref, closest_ref, mask_ref,
                          out_ref, acc_ref, *, weight: float):
    """One (batch b, row-tile r) grid step of the masked BCE relation loss."""
    r = pl.program_id(1)

    @pl.when(r == 0)
    def _init():
        acc_ref[...] = jnp.zeros_like(acc_ref)

    # Native-dtype logits (e.g. bf16) upcast on-chip; int8 masks -> bool.
    x = logits_ref[...].astype(jnp.float32)            # (1, tR, N)
    valid = valid_ref[...] != 0
    closest = closest_ref[...] != 0
    mask = mask_ref[...] != 0

    loss_mask = (jnp.logical_not(valid) | closest) & mask
    target = (closest & loss_mask).astype(jnp.float32)

    # Numerically stable BCE-with-logits (same as torch):
    #   loss = max(x, 0) - x*z + log1p(exp(-|x|))
    bce = jnp.maximum(x, 0.0) - x * target + jnp.log1p(jnp.exp(-jnp.abs(x)))

    # Hot loop: pure VPU elementwise accumulation into the f32 scratch.
    acc_ref[...] += jnp.where(loss_mask, bce, 0.0)

    @pl.when(r == pl.num_programs(1) - 1)
    def _finalize():
        lane = jnp.sum(acc_ref[...], axis=2, keepdims=True)            # (1, tR, 1)
        out_ref[...] = jnp.sum(lane, axis=1, keepdims=True) * weight   # (1, 1, 1)


def relation_loss(logits, valid_target, closest_target, mask,
                  symmetric: bool = False, weight: float = 1.0,
                  row_tile=None):
    """Pallas wrapper.  Returns per-batch loss of shape (B,)."""
    B, N, N2 = logits.shape
    assert N == N2, "relation tensors must be (B, N, N)"

    valid = valid_target.astype(bool)
    closest = closest_target.astype(bool)
    m = mask.astype(bool)
    if symmetric:
        # Symmetrize / triu once outside the kernel on 1-byte data (XLA fuses
        # this); keeps the per-tile hot path free of full-array XLU transposes.
        valid = valid | jnp.swapaxes(valid, -1, -2)
        closest = closest | jnp.swapaxes(closest, -1, -2)
        m = jnp.triu(m | jnp.swapaxes(m, -1, -2))

    # Masks travel as int8 (1 B/elem); logits stay in their native dtype.
    valid_i8 = valid.astype(jnp.int8)
    closest_i8 = closest.astype(jnp.int8)
    mask_i8 = m.astype(jnp.int8)

    if row_tile is None:
        tR = _pick_row_tile(N, jnp.dtype(logits.dtype).itemsize)
    else:
        tR = int(row_tile)
    assert N % tR == 0, "row_tile must divide N"
    n_row_tiles = N // tR

    kernel = functools.partial(_relation_loss_kernel, weight=float(weight))
    data_spec = pl.BlockSpec((1, tR, N), lambda b, r: (b, r, 0))

    out = pl.pallas_call(
        kernel,
        out_shape=jax.ShapeDtypeStruct((B, 1, 1), jnp.float32),
        grid_spec=pltpu.PrefetchScalarGridSpec(
            num_scalar_prefetch=0,
            grid=(B, n_row_tiles),
            in_specs=[pl.BlockSpec((1, tR, N), lambda b, r: (b, r, 0)),
                      data_spec, data_spec, data_spec],
            out_specs=pl.BlockSpec((1, 1, 1), lambda b, r: (b, 0, 0)),
            scratch_shapes=[pltpu.VMEM((1, tR, N), jnp.float32)],
        ),
        compiler_params=pltpu.CompilerParams(
            dimension_semantics=("parallel", "arbitrary"),
            vmem_limit_bytes=32 * 1024 * 1024,
        ),
    )(logits, valid_i8, closest_i8, mask_i8)
    return out[:, 0, 0]


def relation_loss_ref(logits, valid_target, closest_target, mask,
                      symmetric: bool = False, weight: float = 1.0):
    """Pure-JAX reference mirroring the PyTorch forward (for verification)."""
    valid = valid_target.astype(bool)
    closest = closest_target.astype(bool)
    m = mask.astype(bool)
    if symmetric:
        valid = valid | jnp.swapaxes(valid, -1, -2)
        closest = closest | jnp.swapaxes(closest, -1, -2)
        m = jnp.triu(m | jnp.swapaxes(m, -1, -2))
    loss_mask = (~valid | closest) & m
    z = (closest & loss_mask).astype(jnp.float32)
    x = logits.astype(jnp.float32)
    bce = jnp.maximum(x, 0.0) - x * z + jnp.log1p(jnp.exp(-jnp.abs(x)))
    bce = jnp.where(loss_mask, bce, 0.0)
    return bce.sum(-1).sum(-1) * weight


if __name__ == "__main__":
    key = jax.random.PRNGKey(0)
    ok = True

    # Config 1: small shapes (B=2, N=16), default (full-extent) row block.
    # Config 2: N=256 with explicit row_tile=128 to exercise the multi-step
    #           accumulation path with fully aligned (mult-of-32, mult-of-128) tiles.
    for (B, N, row_tile) in ((2, 16, None), (2, 256, 128)):
        k1, k2, k3, k4 = jax.random.split(jax.random.fold_in(key, N), 4)
        logits_f32 = jax.random.normal(k1, (B, N, N), dtype=jnp.float32)
        valid_target = jax.random.bernoulli(k2, 0.6, (B, N, N))
        closest_target = jax.random.bernoulli(k3, 0.3, (B, N, N))
        mask = jax.random.bernoulli(k4, 0.7, (B, N, N))

        for logits in (logits_f32, logits_f32.astype(jnp.bfloat16)):
            for symmetric in (False, True):
                out = relation_loss(logits, valid_target, closest_target, mask,
                                    symmetric=symmetric, weight=1.0,
                                    row_tile=row_tile)
                out = jax.block_until_ready(out)
                ref = relation_loss_ref(logits, valid_target, closest_target,
                                        mask, symmetric=symmetric, weight=1.0)
                ok = ok and bool(jnp.allclose(out, ref, rtol=1e-5, atol=1e-3))

    if ok:
        print("KERNEL_OK")
    else:
        raise SystemExit("mismatch vs reference")
</pallas_src>

<mosaic_0001>
module attributes {stable_mosaic.version = 11 : i64} {
  func.func @_relation_loss_kernel(%arg0: i32, %arg1: i32, %arg2: memref<1x16x16xf32, #tpu.memory_space<vmem>>, %arg3: memref<1x16x16xi8, #tpu.memory_space<vmem>>, %arg4: memref<1x16x16xi8, #tpu.memory_space<vmem>>, %arg5: memref<1x16x16xi8, #tpu.memory_space<vmem>>, %arg6: memref<1x1x1xf32, #tpu.memory_space<vmem>>, %arg7: memref<1x16x16xf32, #tpu.memory_space<vmem>>) attributes {dimension_semantics = [#tpu.dimension_semantics<parallel>, #tpu.dimension_semantics<arbitrary>], iteration_bounds = array<i64: 2, 1>, scalar_prefetch = 0 : i64, scratch_operands = 1 : i64, tpu.core_type = #tpu.core_type<tc>, window_params = [{transform_indices = @transform_0, window_bounds = array<i64: 1, 16, 16>}, {transform_indices = @transform_1, window_bounds = array<i64: 1, 16, 16>}, {transform_indices = @transform_2, window_bounds = array<i64: 1, 16, 16>}, {transform_indices = @transform_3, window_bounds = array<i64: 1, 16, 16>}, {transform_indices = @transform_4, window_bounds = array<i64: 1, 1, 1>}]} {
    %c0_i32 = arith.constant 0 : i32
    %0 = arith.cmpi eq, %arg1, %c0_i32 : i32
    %1 = arith.extui %0 : i1 to i32
    %c0_i32_0 = arith.constant 0 : i32
    %2 = arith.cmpi ne, %1, %c0_i32_0 : i32
    scf.if %2 {
      %cst_25 = arith.constant 0.000000e+00 : f32
      %37 = vector.broadcast %cst_25 : f32 to vector<1x16x16xf32>
      %c0_26 = arith.constant 0 : index
      %c0_27 = arith.constant 0 : index
      %c0_28 = arith.constant 0 : index
      %38 = vector.load %arg7[%c0_26, %c0_27, %c0_28] : memref<1x16x16xf32, #tpu.memory_space<vmem>>, vector<1x16x16xf32>
      tpu.vector_store %arg7[%c0_26, %c0_27, %c0_28], %37 {strides = array<i32>} : memref<1x16x16xf32, #tpu.memory_space<vmem>>, vector<1x16x16xf32>,
    } else {
    }
    %c0 = arith.constant 0 : index
    %c0_1 = arith.constant 0 : index
    %c0_2 = arith.constant 0 : index
    %3 = vector.load %arg2[%c0, %c0_1, %c0_2] : memref<1x16x16xf32, #tpu.memory_space<vmem>>, vector<1x16x16xf32>
    %c0_3 = arith.constant 0 : index
    %c0_4 = arith.constant 0 : index
    %c0_5 = arith.constant 0 : index
    %4 = vector.load %arg3[%c0_3, %c0_4, %c0_5] : memref<1x16x16xi8, #tpu.memory_space<vmem>>, vector<1x16x16xi8>
    %c0_i8 = arith.constant 0 : i8
    %5 = vector.broadcast %c0_i8 : i8 to vector<1x16x16xi8>
    %6 = arith.cmpi ne, %4, %5 : vector<1x16x16xi8>
    %c0_6 = arith.constant 0 : index
    %c0_7 = arith.constant 0 : index
    %c0_8 = arith.constant 0 : index
    %7 = vector.load %arg4[%c0_6, %c0_7, %c0_8] : memref<1x16x16xi8, #tpu.memory_space<vmem>>, vector<1x16x16xi8>
    %c0_i8_9 = arith.constant 0 : i8
    %8 = vector.broadcast %c0_i8_9 : i8 to vector<1x16x16xi8>
    %9 = arith.cmpi ne, %7, %8 : vector<1x16x16xi8>
    %c0_10 = arith.constant 0 : index
    %c0_11 = arith.constant 0 : index
    %c0_12 = arith.constant 0 : index
    %10 = vector.load %arg5[%c0_10, %c0_11, %c0_12] : memref<1x16x16xi8, #tpu.memory_space<vmem>>, vector<1x16x16xi8>
    %c0_i8_13 = arith.constant 0 : i8
    %11 = vector.broadcast %c0_i8_13 : i8 to vector<1x16x16xi8>
    %12 = arith.cmpi ne, %10, %11 : vector<1x16x16xi8>
    %cst = arith.constant dense<true> : vector<1x16x16xi1>
    %13 = arith.xori %6, %cst : vector<1x16x16xi1>
    %14 = arith.ori %13, %9 : vector<1x16x16xi1>
    %15 = arith.andi %14, %12 : vector<1x16x16xi1>
    %16 = arith.andi %9, %15 : vector<1x16x16xi1>
    %17 = arith.extui %16 : vector<1x16x16xi1> to vector<1x16x16xi32>
    %18 = arith.sitofp %17 : vector<1x16x16xi32> to vector<1x16x16xf32>
    %cst_14 = arith.constant 0.000000e+00 : f32
    %19 = vector.broadcast %cst_14 : f32 to vector<1x16x16xf32>
    %20 = arith.maximumf %3, %19 : vector<1x16x16xf32>
    %21 = arith.mulf %3, %18 : vector<1x16x16xf32>
    %22 = arith.subf %20, %21 : vector<1x16x16xf32>
    %23 = math.absf %3 : vector<1x16x16xf32>
    %cst_15 = arith.constant 0.000000e+00 : f32
    %24 = vector.broadcast %cst_15 : f32 to vector<1x16x16xf32>
    %25 = arith.subf %24, %23 : vector<1x16x16xf32>
    %26 = math.exp %25 : vector<1x16x16xf32>
    %27 = math.log1p %26 : vector<1x16x16xf32>
    %28 = arith.addf %22, %27 : vector<1x16x16xf32>
    %c0_16 = arith.constant 0 : index
    %c0_17 = arith.constant 0 : index
    %c0_18 = arith.constant 0 : index
    %29 = vector.load %arg7[%c0_16, %c0_17, %c0_18] : memref<1x16x16xf32, #tpu.memory_space<vmem>>, vector<1x16x16xf32>
    %cst_19 = arith.constant 0.000000e+00 : f32
    %30 = vector.broadcast %cst_19 : f32 to vector<1x16x16xf32>
    %31 = arith.select %15, %28, %30 : vector<1x16x16xi1>, vector<1x16x16xf32>
    %32 = arith.addf %29, %31 : vector<1x16x16xf32>
    %c0_20 = arith.constant 0 : index
    %c0_21 = arith.constant 0 : index
    %c0_22 = arith.constant 0 : index
    %33 = vector.load %arg7[%c0_20, %c0_21, %c0_22] : memref<1x16x16xf32, #tpu.memory_space<vmem>>, vector<1x16x16xf32>
    tpu.vector_store %arg7[%c0_20, %c0_21, %c0_22], %32 {strides = array<i32>} : memref<1x16x16xf32, #tpu.memory_space<vmem>>, vector<1x16x16xf32>,
    %c0_i32_23 = arith.constant 0 : i32
    %34 = arith.cmpi eq, %arg1, %c0_i32_23 : i32
    %35 = arith.extui %34 : i1 to i32
    %c0_i32_24 = arith.constant 0 : i32
    %36 = arith.cmpi ne, %35, %c0_i32_24 : i32
    scf.if %36 {
      %c0_25 = arith.constant 0 : index
      %c0_26 = arith.constant 0 : index
      %c0_27 = arith.constant 0 : index
      %37 = vector.load %arg7[%c0_25, %c0_26, %c0_27] : memref<1x16x16xf32, #tpu.memory_space<vmem>>, vector<1x16x16xf32>
      %cst_28 = arith.constant dense<0.000000e+00> : vector<1x16xf32>
      %38 = vector.multi_reduction <add>, %37, %cst_28 [2] : vector<1x16x16xf32> to vector<1x16xf32>
      %39 = vector.shape_cast %38 : vector<1x16xf32> to vector<1x16x1xf32>
      %cst_29 = arith.constant dense<0.000000e+00> : vector<1x1xf32>
      %40 = vector.multi_reduction <add>, %39, %cst_29 [1] : vector<1x16x1xf32> to vector<1x1xf32>
      %41 = vector.shape_cast %40 : vector<1x1xf32> to vector<1x1x1xf32>
      %cst_30 = arith.constant 1.000000e+00 : f32
      %42 = vector.broadcast %cst_30 : f32 to vector<1x1x1xf32>
      %43 = arith.mulf %41, %42 : vector<1x1x1xf32>
      %c0_31 = arith.constant 0 : index
      %c0_32 = arith.constant 0 : index
      %c0_33 = arith.constant 0 : index
      %44 = vector.load %arg6[%c0_31, %c0_32, %c0_33] : memref<1x1x1xf32, #tpu.memory_space<vmem>>, vector<1x1x1xf32>
      tpu.vector_store %arg6[%c0_31, %c0_32, %c0_33], %43 {strides = array<i32>} : memref<1x1x1xf32, #tpu.memory_space<vmem>>, vector<1x1x1xf32>,
    } else {
    }
    return
  }
  func.func @transform_0(%arg0: i32, %arg1: i32) -> (i32, i32, i32) {
    %c0_i32 = arith.constant 0 : i32
    %c0_i32_0 = arith.constant 0 : i32
    return %arg0, %arg1, %c0_i32 : i32, i32, i32
  }
  func.func @transform_1(%arg0: i32, %arg1: i32) -> (i32, i32, i32) {
    %c0_i32 = arith.constant 0 : i32
    %c0_i32_0 = arith.constant 0 : i32
    return %arg0, %arg1, %c0_i32 : i32, i32, i32
  }
  func.func @transform_2(%arg0: i32, %arg1: i32) -> (i32, i32, i32) {
    %c0_i32 = arith.constant 0 : i32
    %c0_i32_0 = arith.constant 0 : i32
    return %arg0, %arg1, %c0_i32 : i32, i32, i32
  }
  func.func @transform_3(%arg0: i32, %arg1: i32) -> (i32, i32, i32) {
    %c0_i32 = arith.constant 0 : i32
    %c0_i32_0 = arith.constant 0 : i32
    return %arg0, %arg1, %c0_i32 : i32, i32, i32
  }
  func.func @transform_4(%arg0: i32, %arg1: i32) -> (i32, i32, i32) {
    %c0_i32 = arith.constant 0 : i32
    %c0_i32_0 = arith.constant 0 : i32
    %c0_i32_1 = arith.constant 0 : i32
    return %arg0, %c0_i32, %c0_i32_0 : i32, i32, i32
  }
}

</mosaic_0001>

<bundles_post_ra>
// kernel: tpu_custom_call.1
= control target key start
LH: loop header
LB: loop body
LE: loop exit
PB: predicated region body
PF: predicated region fallthrough
CT: control target
= control target key end

     0   :  { %s1131_s0 = inlined_call_operand.hbm [shape: f32[2,16,16], index: 0, kind: input, shape index: {}]   ;;  %s1132_s1 = inlined_call_operand.hbm [shape: s8[2,16,16], index: 1, kind: input, shape index: {}]   ;;  %s1133_s2 = inlined_call_operand.hbm [shape: s8[2,16,16], index: 2, kind: input, shape index: {}]   ;;  %s1134_s3 = inlined_call_operand.hbm [shape: s8[2,16,16], index: 3, kind: input, shape index: {}]   ;;  %s1135_s4 = inlined_call_operand.vmem [shape: f32[2,1,1], index: 4, kind: output, shape index: {}]  }
   0x1   :  { %1143 = sst [smem:[#allocation16_spill]] %s1131_s0 }
   0x2   :  { %1144 = sst [smem:[#allocation17_spill]] %s1132_s1 }
   0x3   :  { %9 = vsyncpa [#allocation4], 0 }
   0x4   :  { %11 = vsyncpa [#allocation4 + $0x1], 0 }
   0x5   :  { %12 = vsyncpa [#allocation6], 0 }
   0x6   :  { %14 = vsyncpa [#allocation6 + $0x1], 0 }
   0x7   :  { %15 = vsyncpa [#allocation9], 0 }
   0x8   :  { %17 = vsyncpa [#allocation9 + $0x1], 0  ;;  %s952_s15 = smov 0   ;;  %s954_s16 = smov 0  }
   0x9   :  { %s956_s17 = smov 0   ;;  %s958_s18 = smov 0  }
   0xa   :  { %s960_s19 = smov 0   ;;  %s962_s20 = smov 0  }
   0xb LB: > { %1145 = sst [smem:[#allocation13_spill]] %s914_s19  ;;  %s1136_s21 = sadd.s32 4294967295, %s918_s20   ;;  %s918_s20 = sphi %s962_s20, %s23_s20   ;;  %s914_s19 = sphi %s960_s19, %s1162_s19   ;;  %s910_s18 = sphi %s958_s18, %s1161_s18   ;;  %s906_s17 = sphi %s956_s17, %s1165_s17   ;;  %s902_s16 = sphi %s954_s16, %s1164_s16   ;;  %s898_s15 = sphi %s952_s15, %s1163_s15  }
   0xc   : > { %s35_s22 = sadd.s32 1, %s914_s19  ;;  %s44_s23 = sadd.s32 1, %s906_s17 }
   0xd   : > { %p37_p0 = scmp.ge.s32.totalorder %s35_s22, 2  ;;  %p51_p1 = scmp.ne.s32.totalorder %s906_s17, %s902_s16 }
   0xe   : > { %p52_p2 = scmp.eq.s32.totalorder %s918_s20, 0  ;;  %p57_p4 = scmp.ne.s32.totalorder %s902_s16, %s898_s15 }
   0xf   : > { %s1167_s22 = smov (%p37_p0, %s35_s22), 0  ;;  %p58_p5 = scmp.eq.s32.totalorder %s1136_s21, 0 }
  0x10   : > { %1146 = sst [smem:[#allocation14_spill]] %s1167_s22  ;;  %p53_p3 = por %p52_p2, %p51_p1 }
  0x11   : > { %s39_s24 = ssub.s32 %s914_s19, %s1167_s22  ;;  %p993_p7 = por %p58_p5, %p57_p4 }
  0x12   : > { %p42_p6 = scmp.eq.s32.totalorder %s39_s24, 0  ;;  %p676_p8 = scmp.lt.s32.totalorder %s918_s20, 2 }
  0x13   : > { %s1002_s27 = sand.u32 1, %s906_s17   ;;  %s215_s29 = sand.u32 1, %s918_s20  }
  0x14   : > { %s999_s26 = scalar_select %p42_p6, %s906_s17, %s44_s23  }
  0x15   : > { %p1004_p9 = pnand %p676_p8, %p53_p3  ;;  %s1010_s30 = sshll.u32 %s1002_s27, 2 }
  0x16   : > { %1148 = sst [smem:[#allocation15_spill]] %s999_s26  ;;  %s1013_s5 = sshll.u32 %s914_s19, 2 }
  0x17   : > { %s1150_s1 = sld [smem:[#allocation17_spill]]  ;;  %s219_s9 = scalar_lea.vmem [#allocation5], %s1010_s30 }
  0x18   : > { %s229_s10 = sshll.u32 %s219_s9, 4  ;;  %p642_p10 = scmp.ge.s32.totalorder %s918_s20, 1  ;;  %s230_s10 = int_to_ptr.vmem [resolvable:$true] %s229_s10 }
  0x19   : > { %s216_s12 = scalar_lea.sflag [#allocation6], %s215_s29  ;;  %s1137_s13 = smov 32  }
  0x1a   : > { %s1139_s14 = smov 2   ;;  %p285_p11 = scmp.lt.s32.totalorder %s918_s20, 3 }
  0x1b   : > { %s630_s23 = sshll.u32 %s1002_s27, 4  ;;  %s651_s24 = sshll.u32 %s914_s19, 4 }
  0x1c   : > { %p1027_p12 = pnand %p642_p10, %p285_p11  ;;  %s1152_s0 = sld [smem:[#allocation16_spill]] }
  0x1d   : > { %s226_s8 = scalar_lea.hbm %s1150_s1, %s1013_s5  ;;  %s250_s6 = scalar_lea.hbm %s1133_s2, %s1013_s5 }
  0x1e   : > { %s227_s11 = sshll.u32 %s226_s8, 4  ;;  %s195_s8 = scalar_lea.vmem [#allocation3], %s630_s23  ;;  %s228_s11 = int_to_ptr.hbm [resolvable:$true] %s227_s11 }
  0x1f   : > { %669 = dma.hbm_to_vmem [thread:$0]  (!%p1004_p9), %s228_s11, 64, %s230_s10, %s216_s12, %s1137_s13, %s1137_s13, %s1139_s14  }
  0x20   : > { %s205_s9 = sshll.u32 %s195_s8, 4  ;;  %s192_s10 = scalar_lea.sflag [#allocation4], %s1002_s27  ;;  %s206_s9 = int_to_ptr.vmem [resolvable:$true] %s205_s9 }
  0x21   : > { %s922_s11 = smov 128   ;;  %s923_s13 = smov 8  }
  0x22   : > { %s202_s29 = scalar_lea.hbm %s1152_s0, %s651_s24  ;;  %s243_s24 = scalar_lea.vmem [#allocation7], %s1010_s30 }
  0x23   : > { %s203_s21 = sshll.u32 %s202_s29, 4  ;;  %s253_s7 = sshll.u32 %s243_s24, 4  ;;  %s204_s21 = int_to_ptr.hbm [resolvable:$true] %s203_s21  ;;  %s254_s7 = int_to_ptr.vmem [resolvable:$true] %s253_s7 }
  0x24   : > { %666 = dma.hbm_to_vmem [thread:$0]  (!%p1004_p9), %s204_s21, 256, %s206_s9, %s192_s10, %s922_s11, %s922_s11, %s923_s13  }
  0x25   : > { %s251_s23 = sshll.u32 %s250_s6, 4  ;;  %s1153_s29 = smov 2   ;;  %s252_s23 = int_to_ptr.hbm [resolvable:$true] %s251_s23 }
  0x26   : > { %s1154_s8 = smov 32   ;;  %s274_s19 = scalar_lea.hbm %s1134_s3, %s1013_s5 }
  0x27   : > { %672 = dma.hbm_to_vmem [thread:$0]  (!%p1004_p9), %s252_s23, 64, %s254_s7, %s216_s12, %s1154_s8, %s1154_s8, %s1153_s29  }
  0x28   : > { %s275_s26 = sshll.u32 %s274_s19, 4  ;;  %s267_s21 = scalar_lea.vmem [#allocation8], %s1010_s30  ;;  %s276_s26 = int_to_ptr.hbm [resolvable:$true] %s275_s26 }
  0x29   : > { %s277_s13 = sshll.u32 %s267_s21, 4  ;;  %s264_s1 = scalar_lea.sflag [#allocation9], %s1002_s27  ;;  %s278_s13 = int_to_ptr.vmem [resolvable:$true] %s277_s13 }
  0x2a   : > { %675 = dma.hbm_to_vmem [thread:$0]  (!%p1004_p9), %s276_s26, 64, %s278_s13, %s264_s1, %s1154_s8, %s1154_s8, %s1153_s29  }
  0x2b   : > { %289 = sbr.rel (%p1027_p12) target bundleno = 237 (0xed), region = 36  ;;  %s291_s12 = sand.u32 (!%p1027_p12), 1, %s902_s16  }
  0x2c   : > { %s643_s14 = sshll.u32 (!%p1027_p12), %s291_s12, 4  ;;  %s292_s0 = scalar_lea.sflag (!%p1027_p12), [#allocation4], %s291_s12 }
  0x2d   : > { %s295_s22 = scalar_lea.vmem (!%p1027_p12), [#allocation3], %s643_s14 }
  0x30   : > { %885 = dma.done.wait (%p993_p7), %s292_s0, 256  }
  0x31   : > { %887 = vsyncadd (%p993_p7), %s292_s0, 4294967040  ;;  %s1155_s19 = sadd.s32 4294967295, %s918_s20   ;;  %s644_s28 = sshll.u32 %s291_s12, 2 }
  0x32   : > { %s301_s27 = sand.u32 1, %s1155_s19   ;;  %s305_s30 = scalar_lea.vmem [#allocation5], %s644_s28 }
  0x33   : > { %s302_s26 = scalar_lea.sflag [#allocation6], %s301_s27 }
  0x34   : > { %889 = dma.done.wait (%p993_p7), %s302_s26, 128  }
  0x35   : > { %891 = vsyncadd (%p993_p7), %s302_s26, 4294967168  ;;  %s315_s5 = scalar_lea.vmem [#allocation7], %s644_s28  ;;  %s322_s15 = scalar_lea.sflag [#allocation9], %s291_s12 }
  0x36   : > { %s325_s9 = scalar_lea.vmem [#allocation8], %s644_s28 }
  0x37   : > { %893 = dma.done.wait (%p993_p7), %s322_s15, 64  }
  0x38   : > { %895 = vsyncadd (%p993_p7), %s322_s15, 4294967232  ;;  %vm377_vm0 = vcmask 130048   ;;  %v924_v0 = vmov 0.0   ;;  %v380_v1 = vld [vmem:[%s295_s22] sm:$0xff]  ;;  %v1079_v2 = vld [vmem:[%s295_s22 + $0x8] sm:$0xff]  ;;  %vm925_vm5 = vmmov 1  }
  0x39   : > { %378 = vst.msk [vmem:[#allocation2] sm:$0xff] %vm377_vm0, %v924_v0  ;;  %v382_v3 = vld [vmem:[%s305_s30] sm:$0x3]  ;;  %v383_v4 = vld [vmem:[%s305_s30 + $0x2] sm:$0x3]  ;;  %v926_v17 = vmov 0  }
  0x3a   : > { %379 = vst.msk [vmem:[#allocation2 + $0x8] sm:$0xff] %vm377_vm0, %v924_v0  ;;  %vm384_vm1 = vnez %v382_v3  ;;  %v386_v5 = vld [vmem:[%s315_s5] sm:$0x3]  ;;  %v387_v6 = vld [vmem:[%s315_s5 + $0x2] sm:$0x3]  ;;  %vm385_vm2 = vnez %v383_v4  ;;  %v412_v30 = vmax.f32 %v380_v1, 0.0 }
  0x3b   : > { %vm388_vm3 = vnez %v386_v5  ;;  %vm389_vm4 = vnez %v387_v6  ;;  %v390_v7 = vld [vmem:[%s325_s9] sm:$0x3]  ;;  %v391_v8 = vld [vmem:[%s325_s9 + $0x2] sm:$0x3]  ;;  %vm394_vm6 = vmxor %vm384_vm1, %vm925_vm5  ;;  %v418_v9 = vand.u32 2147483647, %v380_v1 }
  0x3c   : > { %vm392_vm7 = vnez %v390_v7  ;;  %vm395_vm8 = vmxor %vm385_vm2, %vm925_vm5  ;;  %vm393_vm9 = vnez %v391_v8  ;;  %v419_v10 = vand.u32 2147483647, %v1079_v2  ;;  %v413_v36 = vmax.f32 %v1079_v2, 0.0  ;;  %p368_p13 = scmp.lt.s32.totalorder %s910_s18, 1 }
  0x3d   : > { %vm396_vm10 = vmor %vm394_vm6, %vm388_vm3  ;;  %v420_v11 = vsub.f32 0.0, %v418_v9 }
  0x3e   : > { %vm397_vm11 = vmor %vm395_vm8, %vm389_vm4  ;;  %v421_v13 = vsub.f32 0.0, %v419_v10  ;;  %s1169_s18 = smov (!%p368_p13, %s910_s18), 1 }
  0x3f   : > { %vm1084_vm12 = vmand %vm396_vm10, %vm392_vm7  ;;  %v422_v15 = vmul.f32 1.442695, %v420_v11  ;;  %s370_s11 = scalar_lea.vmem %s1135_s4, %s1169_s18  ;;  %vm479_vm7 = vcmask 0  }
  0x40   : > { %vm1088_vm13 = vmand %vm397_vm11, %vm393_vm9  ;;  %v424_v16 = vmul.f32 1.442695, %v421_v13  ;;  %v448_v35 = vsel %vm1084_vm12, 16843009, %v926_v17  ;;  %v446_v53 = vld [vmem:[#allocation2] sm:$0xff] }
  0x41   : > { %vm400_vm14 = vmand %vm388_vm3, %vm1084_vm12  ;;  %732 = vpow2.f32 %v422_v15  ;;  %v449_v39 = vsel %vm1088_vm13, 16843009, %v926_v17  ;;  %v450_v41 = vunpack.c.0.s8 %v448_v35  ;;  %v447_v55 = vld [vmem:[#allocation2 + $0x8] sm:$0xff] }
  0x42   : > { %vm401_vm15 = vmand %vm389_vm4, %vm1088_vm13  ;;  %v402_v18 = vsel %vm400_vm14, 16843009, %v926_v17  ;;  %734 = vpow2.f32 %v424_v16  ;;  %v451_v45 = vunpack.c.0.s8 %v449_v39 }
  0x43   : > { %v403_v19 = vsel %vm401_vm15, 16843009, %v926_v17  ;;  %v404_v20 = vunpack.c.0.s8 %v402_v18  ;;  %vm452_vm5 = vcmp.ne.s32.totalorder %v450_v41, 0 }
  0x44   : > { %v405_v21 = vunpack.c.0.s8 %v403_v19  ;;  %vm453_vm6 = vcmp.ne.s32.totalorder %v451_v45, 0 }
  0x45   : > { %vm406_vm1 = vcmp.ne.s32.totalorder %v404_v20, 0 }
  0x46   : > { %vm407_vm2 = vcmp.ne.s32.totalorder %v405_v21, 0  ;;  %v647_v26 = vsel %vm406_vm1, 1.0, %v924_v0 }
  0x47   : > { %v733_v22 = vpop.eup %732  ;;  %v648_v29 = vsel %vm407_vm2, 1.0, %v924_v0  ;;  %v414_v32 = vmul.f32 %v647_v26, %v380_v1 }
  0x48   : > { %v735_v23 = vpop.eup %734  ;;  %v426_v24 = vadd.f32 1.0, %v733_v22  ;;  %v429_v25 = vmul.f32 -0.5, %v733_v22  ;;  %v432_v33 = vand.u32 2147483647, %v733_v22  ;;  %v415_v37 = vmul.f32 %v648_v29, %v1079_v2 }
  0x49   : > { %v435_v27 = vadd.f32 1.0, %v735_v23  ;;  %v438_v28 = vmul.f32 -0.5, %v735_v23  ;;  %v441_v38 = vand.u32 2147483647, %v735_v23  ;;  %v416_v43 = vsub.f32 %v412_v30, %v414_v32 }
  0x4a   : > { %736 = vlog2.f32 %v426_v24  ;;  %v430_v31 = vadd.f32 1.0, %v429_v25  ;;  %vm433_vm3 = vcmp.lt.f32.partialorder %v432_v33, 0.0004427343  ;;  %v417_v47 = vsub.f32 %v413_v36, %v415_v37 }
  0x4b   : > { %738 = vlog2.f32 %v435_v27  ;;  %v439_v34 = vadd.f32 1.0, %v438_v28  ;;  %vm442_vm4 = vcmp.lt.f32.partialorder %v441_v38, 0.0004427343 }
  0x4c   : > { %v431_v40 = vmul.f32 %v733_v22, %v430_v31 }
  0x4d   : > { %v440_v44 = vmul.f32 %v735_v23, %v439_v34 }
  0x50   : > { %v737_v42 = vpop.eup %736 }
  0x51   : > { %v739_v46 = vpop.eup %738  ;;  %v428_v48 = vmul.f32 0.6931472, %v737_v42 }
  0x52   : > { %v437_v49 = vmul.f32 0.6931472, %v739_v46 }
  0x53   : > { %v434_v50 = vsel %vm433_vm3, %v431_v40, %v428_v48 }
  0x54   : > { %v443_v51 = vsel %vm442_vm4, %v440_v44, %v437_v49  ;;  %v444_v52 = vadd.f32 %v434_v50, %v416_v43 }
  0x55   : > { %v445_v54 = vadd.f32 %v443_v51, %v417_v47 }
  0x56   : > { %v454_v56 = vsel %vm452_vm5, %v444_v52, 0.0 }
  0x57   : > { %v455_v57 = vsel %vm453_vm6, %v445_v54, 0.0  ;;  %v456_v58 = vadd.f32 %v454_v56, %v446_v53 }
  0x58   : > { %v457_v59 = vadd.f32 %v455_v57, %v447_v55 }
  0x59   : > { %459 = vst.msk [vmem:[#allocation2] sm:$0xff] %vm377_vm0, %v456_v58 }
  0x5a   : > { %460 = vst.msk [vmem:[#allocation2 + $0x8] sm:$0xff] %vm377_vm0, %v457_v59 }
  0x60   : > { %v464_v60 = vld [vmem:[#allocation2] sm:$0xff] }
  0x61   : > { %v466_v61 = vsel %vm377_vm0, %v464_v60, 0.0  ;;  %v465_v62 = vld [vmem:[#allocation2 + $0x8] sm:$0xff] }
  0x62   : > { %467 = vadd.xlane.f32.xlu0 %v466_v61  ;;  %v469_v63 = vsel %vm377_vm0, %v465_v62, 0.0 }
  0x6a   : > { %470 = vadd.xlane.f32.xlu0 %v469_v63 }
  0xd5   : > { %v468_v0 = vpop.xlane.xlu0 %467 }
  0xdd   : > { %v471_v1 = vpop.xlane.xlu0 %470 }
  0xde   : > { %v472_v2 = vadd.f32 %v471_v1, %v468_v0 }
  0xe0   : > { %v473_v3 = vrot.slane %v472_v2, 4 }
  0xe2   : > { %v474_v4 = vadd.f32 %v473_v3, %v472_v2 }
  0xe4   : > { %v475_v5 = vrot.slane %v474_v4, 2 }
  0xe6   : > { %v476_v6 = vadd.f32 %v475_v5, %v474_v4 }
  0xe8   : > { %v477_v7 = vrot.slane %v476_v6, 1 }
  0xea   : > { %v478_v8 = vadd.f32 %v477_v7, %v476_v6 }
  0xec   : > { %480 = vst.msk [vmem:[%s370_s11] sm:$0x1] %vm479_vm7, %v478_v8 }
  0xed PF: > { %s23_s20 = sadd.s32 1, %s918_s20   ;;  %s1160_s6 = sld [smem:[#allocation15_spill]] }
  0xee   : > { %p20_p0 = scmp.ge.s32.totalorder %s23_s20, 4   ;;  %s1161_s18 = sld [smem:[#allocation13_spill]] }
  0xef   : > { %s1162_s19 = sld [smem:[#allocation14_spill]]  ;;  %s1163_s15 = smov %s902_s16 }
  0xf0   : > { %s1164_s16 = smov %s906_s17  ;;  %22 = sbr.rel (!%p20_p0) target bundleno = 11 (0xb), region = 121 }
  0xf3   : > { %s1165_s17 = smov %s1160_s6 }
  0xf5   :  { %498 = vsyncpa [#allocation4], 1 }
  0xf6   :  { %500 = vsyncpa [#allocation4 + $0x1], 1 }
  0xf7   :  { %501 = vsyncpa [#allocation6], 1 }
  0xf8   :  { %503 = vsyncpa [#allocation6 + $0x1], 1 }
  0xf9   :  { %504 = vsyncpa [#allocation9], 1 }
  0xfa   :  { %506 = vsyncpa [#allocation9 + $0x1], 1 }

</bundles_post_ra>
